<compile_context>
chip_gen: v6e
topology: v6e:2x2x1
jax: 0.10.0
libtpu: 0.0.40
codegen_flags: <defaults>
</compile_context>

<pallas_src>
import functools

import jax
import jax.numpy as jnp
from jax.experimental import pallas as pl
from jax.experimental.pallas import tpu as pltpu


def _round_up(x: int, m: int) -> int:
    return ((x + m - 1) // m) * m


def mlp_kernel(x_ref, w1_ref, b1_ref, w2_ref, b2_ref, o_ref):
    # Hidden layer: h = relu(x @ W1 + b1)   (MXU matmul, f32 accumulation)
    h = jnp.dot(x_ref[...], w1_ref[...], preferred_element_type=jnp.float32)
    h = jnp.maximum(h + b1_ref[...], 0.0)          # [TB, H] + [1, H] broadcast
    # Output layer: o = h @ W2 + b2
    o = jnp.dot(h.astype(w2_ref.dtype), w2_ref[...],
                preferred_element_type=jnp.float32)
    o_ref[...] = (o + b2_ref[...]).astype(o_ref.dtype)


@functools.partial(jax.jit, static_argnames=("block_b",))
def mlp_classifier(x, w1, b1, w2, b2, *, block_b: int = 2048):
    """x: [B, H], w1: [H, H], b1: [1, H], w2: [H, O], b2: [1, O] -> [B, O].

    The batch is tiled over a 1-D "parallel" grid with a cdiv grid (partial
    last block handled by Pallas); feature dims are used unpadded since a
    block dim equal to the full array dim is always legal.  Weights/biases
    use a constant index_map and stay VMEM-resident across all steps.
    """
    B, H = x.shape
    O = w2.shape[1]

    # Batch tile: multiple of 8 (sublane), capped by block_b, and capped at
    # ceil(B/2) so batches larger than one tile always yield >= 2 grid steps
    # (keeps both v7x TensorCores busy; harmless on v5e/v6e).
    block_b = max(8, _round_up(block_b, 8))
    half_b = _round_up(max(1, (B + 1) // 2), 8)
    TB = min(block_b, half_b)

    grid = (pl.cdiv(B, TB),)
    return pl.pallas_call(
        mlp_kernel,
        out_shape=jax.ShapeDtypeStruct((B, O), x.dtype),
        grid=grid,
        in_specs=[
            # Batch-tiled activations (auto double-buffered across steps).
            pl.BlockSpec((TB, H), lambda i: (i, 0)),
            # Weights / biases: constant block index -> loaded once, resident.
            pl.BlockSpec((H, H), lambda i: (0, 0)),
            pl.BlockSpec((1, H), lambda i: (0, 0)),
            pl.BlockSpec((H, O), lambda i: (0, 0)),
            pl.BlockSpec((1, O), lambda i: (0, 0)),
        ],
        out_specs=pl.BlockSpec((TB, O), lambda i: (i, 0)),
        compiler_params=pltpu.CompilerParams(
            dimension_semantics=("parallel",),
        ),
    )(x, w1, b1, w2, b2)


def init_params(key, hidden, out):
    """Deterministic init mimicking torch.nn.Linear (U(-1/sqrt(fan_in), +))."""
    k1, k2, k3, k4 = jax.random.split(key, 4)
    bound1 = 1.0 / jnp.sqrt(hidden)
    w1 = jax.random.uniform(k1, (hidden, hidden), jnp.float32, -bound1, bound1)
    b1 = jax.random.uniform(k2, (1, hidden), jnp.float32, -bound1, bound1)
    bound2 = 1.0 / jnp.sqrt(hidden)
    w2 = jax.random.uniform(k3, (hidden, out), jnp.float32, -bound2, bound2)
    b2 = jax.random.uniform(k4, (1, out), jnp.float32, -bound2, bound2)
    return w1, b1, w2, b2


def _reference(x, w1, b1, w2, b2):
    return jnp.maximum(x @ w1 + b1, 0.0) @ w2 + b2


if __name__ == "__main__":
    key = jax.random.PRNGKey(0)
    kx, kp, kx2 = jax.random.split(key, 3)

    mlp_hidden_channels = 32
    mlp_out_channels = 4
    w1, b1, w2, b2 = init_params(kp, mlp_hidden_channels, mlp_out_channels)

    # Small batch (matches the module's typical use): single grid step.
    batch = 8
    x = jax.random.normal(kx, (batch, mlp_hidden_channels), jnp.float32)
    out = jax.block_until_ready(mlp_classifier(x, w1, b1, w2, b2))
    ref = _reference(x, w1, b1, w2, b2)
    assert out.shape == (batch, mlp_out_channels)
    assert jnp.allclose(out, ref, atol=1e-5, rtol=1e-5)

    # Larger, non-tile-multiple batch exercising the cdiv grid with a masked
    # partial last block (3 steps of 128 rows, last block 44 valid rows).
    batch2 = 300
    x2 = jax.random.normal(kx2, (batch2, mlp_hidden_channels), jnp.float32)
    out2 = jax.block_until_ready(
        mlp_classifier(x2, w1, b1, w2, b2, block_b=128))
    ref2 = _reference(x2, w1, b1, w2, b2)
    assert out2.shape == (batch2, mlp_out_channels)
    assert jnp.allclose(out2, ref2, atol=1e-5, rtol=1e-5)

    print("KERNEL_OK")
</pallas_src>

<mosaic_0001>
module attributes {stable_mosaic.version = 11 : i64} {
  func.func @mlp_kernel(%arg0: i32, %arg1: memref<8x32xf32, #tpu.memory_space<vmem>>, %arg2: memref<32x32xf32, #tpu.memory_space<vmem>>, %arg3: memref<1x32xf32, #tpu.memory_space<vmem>>, %arg4: memref<32x4xf32, #tpu.memory_space<vmem>>, %arg5: memref<1x4xf32, #tpu.memory_space<vmem>>, %arg6: memref<8x4xf32, #tpu.memory_space<vmem>>) attributes {dimension_semantics = [#tpu.dimension_semantics<parallel>], iteration_bounds = array<i64: 1>, scalar_prefetch = 0 : i64, scratch_operands = 0 : i64, tpu.core_type = #tpu.core_type<tc>, window_params = [{transform_indices = @transform_0, window_bounds = array<i64: 8, 32>}, {pipeline_mode = #tpu.pipeline_mode<synchronous>, transform_indices = @transform_1, window_bounds = array<i64: 32, 32>}, {pipeline_mode = #tpu.pipeline_mode<synchronous>, transform_indices = @transform_2, window_bounds = array<i64: 1, 32>}, {pipeline_mode = #tpu.pipeline_mode<synchronous>, transform_indices = @transform_3, window_bounds = array<i64: 32, 4>}, {pipeline_mode = #tpu.pipeline_mode<synchronous>, transform_indices = @transform_4, window_bounds = array<i64: 1, 4>}, {transform_indices = @transform_5, window_bounds = array<i64: 8, 4>}]} {
    %c0 = arith.constant 0 : index
    %c0_0 = arith.constant 0 : index
    %0 = vector.load %arg1[%c0, %c0_0] : memref<8x32xf32, #tpu.memory_space<vmem>>, vector<8x32xf32>
    %c0_1 = arith.constant 0 : index
    %c0_2 = arith.constant 0 : index
    %1 = vector.load %arg2[%c0_1, %c0_2] : memref<32x32xf32, #tpu.memory_space<vmem>>, vector<32x32xf32>
    %cst = arith.constant dense<0.000000e+00> : vector<8x32xf32>
    %2 = tpu.matmul %0, %1, %cst {dimension_numbers = #tpu.dot_dimension_numbers<[1], [0], [0], [1], [0, 0, 1, 1], [], []>} : vector<8x32xf32>, vector<32x32xf32>, vector<8x32xf32> -> vector<8x32xf32>
    %c0_3 = arith.constant 0 : index
    %c0_4 = arith.constant 0 : index
    %3 = vector.load %arg3[%c0_3, %c0_4] : memref<1x32xf32, #tpu.memory_space<vmem>>, vector<1x32xf32>
    %4 = vector.broadcast %3 : vector<1x32xf32> to vector<8x32xf32>
    %5 = arith.addf %2, %4 : vector<8x32xf32>
    %cst_5 = arith.constant 0.000000e+00 : f32
    %6 = vector.broadcast %cst_5 : f32 to vector<8x32xf32>
    %7 = arith.maximumf %5, %6 : vector<8x32xf32>
    %c0_6 = arith.constant 0 : index
    %c0_7 = arith.constant 0 : index
    %8 = vector.load %arg4[%c0_6, %c0_7] : memref<32x4xf32, #tpu.memory_space<vmem>>, vector<32x4xf32>
    %cst_8 = arith.constant dense<0.000000e+00> : vector<8x4xf32>
    %9 = tpu.matmul %7, %8, %cst_8 {dimension_numbers = #tpu.dot_dimension_numbers<[1], [0], [0], [1], [0, 0, 1, 1], [], []>} : vector<8x32xf32>, vector<32x4xf32>, vector<8x4xf32> -> vector<8x4xf32>
    %c0_9 = arith.constant 0 : index
    %c0_10 = arith.constant 0 : index
    %10 = vector.load %arg5[%c0_9, %c0_10] : memref<1x4xf32, #tpu.memory_space<vmem>>, vector<1x4xf32>
    %11 = vector.broadcast %10 : vector<1x4xf32> to vector<8x4xf32>
    %12 = arith.addf %9, %11 : vector<8x4xf32>
    %c0_11 = arith.constant 0 : index
    %c0_12 = arith.constant 0 : index
    %13 = vector.load %arg6[%c0_11, %c0_12] : memref<8x4xf32, #tpu.memory_space<vmem>>, vector<8x4xf32>
    tpu.vector_store %arg6[%c0_11, %c0_12], %12 {strides = array<i32>} : memref<8x4xf32, #tpu.memory_space<vmem>>, vector<8x4xf32>,
    return
  }
  func.func @transform_0(%arg0: i32) -> (i32, i32) {
    %c0_i32 = arith.constant 0 : i32
    %c0_i32_0 = arith.constant 0 : i32
    return %arg0, %c0_i32 : i32, i32
  }
  func.func @transform_1(%arg0: i32) -> (i32, i32) {
    %c0_i32 = arith.constant 0 : i32
    %c0_i32_0 = arith.constant 0 : i32
    %c0_i32_1 = arith.constant 0 : i32
    return %c0_i32, %c0_i32_0 : i32, i32
  }
  func.func @transform_2(%arg0: i32) -> (i32, i32) {
    %c0_i32 = arith.constant 0 : i32
    %c0_i32_0 = arith.constant 0 : i32
    %c0_i32_1 = arith.constant 0 : i32
    return %c0_i32, %c0_i32_0 : i32, i32
  }
  func.func @transform_3(%arg0: i32) -> (i32, i32) {
    %c0_i32 = arith.constant 0 : i32
    %c0_i32_0 = arith.constant 0 : i32
    %c0_i32_1 = arith.constant 0 : i32
    return %c0_i32, %c0_i32_0 : i32, i32
  }
  func.func @transform_4(%arg0: i32) -> (i32, i32) {
    %c0_i32 = arith.constant 0 : i32
    %c0_i32_0 = arith.constant 0 : i32
    %c0_i32_1 = arith.constant 0 : i32
    return %c0_i32, %c0_i32_0 : i32, i32
  }
  func.func @transform_5(%arg0: i32) -> (i32, i32) {
    %c0_i32 = arith.constant 0 : i32
    %c0_i32_0 = arith.constant 0 : i32
    return %arg0, %c0_i32 : i32, i32
  }
}

</mosaic_0001>

<bundles_post_ra>
// kernel: mlp_classifier.1
= control target key start
LH: loop header
LB: loop body
LE: loop exit
PB: predicated region body
PF: predicated region fallthrough
CT: control target
= control target key end

     0   :  { %10 = vsyncpa [#allocation3], 0  ;;  %s271_s18 = smov [#allocation2]   ;;  %s342_s0 = inlined_call_operand.hbm [shape: f32[8,32], index: 0, kind: input, shape index: {}]   ;;  %s343_s1 = inlined_call_operand.vmem [shape: f32[32,32], index: 1, kind: input, shape index: {}]   ;;  %s344_s2 = inlined_call_operand.vmem [shape: f32[1,32], index: 2, kind: input, shape index: {}]   ;;  %s345_s3 = inlined_call_operand.vmem [shape: f32[32,4], index: 3, kind: input, shape index: {}]   ;;  %s346_s4 = inlined_call_operand.vmem [shape: f32[1,4], index: 4, kind: input, shape index: {}]   ;;  %s347_s5 = inlined_call_operand.vmem [shape: f32[8,4], index: 5, kind: output, shape index: {}]  }
   0x1   :  { %s17_s19 = sshll.u32 %s271_s18, 4  ;;  %s18_s19 = int_to_ptr.vmem [resolvable:$true] %s17_s19 }
   0x2   :  { %s257_s20 = scalar_lea.vmem %s18_s19, 128  ;;  %p262_p1 = scmp.lt.s32.totalorder %s18_s19, %s18_s19 }
   0x3   :  { %p258_p0 = scmp.ne.s32.totalorder %s18_s19, %s257_s20  ;;  %p263_p2 = scmp.lt.s32.totalorder %s257_s20, %s257_s20 }
   0x5   :  { %p264_p3 = por %p263_p2, %p262_p1 }
   0x7   :  { %p265_p4 = pnand %p264_p3, %p258_p0 }
   0x9   :  { %268 = shalt.err (!%p265_p4)
}
   0xa   :  { %20 = dma.hbm_to_vmem [thread:$0]  %s342_s0, 128, %s18_s19, [#allocation3]  }
   0xb   :  { %269 = dma.done.wait [#allocation3], 128  }
   0xc   :  { %270 = vsyncadd [#allocation3], 4294967168  ;;  %v272_v0 = vmov 0.0   ;;  %vm273_vm0 = vmmov 0   ;;  %v36_v1 = vld [vmem:[%s343_s1 + $0x18] sm:$0xff]  ;;  %v35_v2 = vld [vmem:[%s343_s1 + $0x10] sm:$0xff] }
   0xd   :  { %224 = vmatprep.subr.mxu0 %v272_v0  ;;  %232 = vmatprep.mubr.msk.f32.mxu0 %vm273_vm0, %v272_v0  ;;  %v122_v3 = vld [vmem:[%s345_s3 + $0x18] sm:$0xff]  ;;  %v34_v4 = vld [vmem:[%s343_s1 + $0x8] sm:$0xff]  ;;  %v33_v5 = vld [vmem:[%s343_s1] sm:$0xff]  ;;  %vm44_vm1 = vcmask 261120   ;;  %vm203_vm2 = vcmask 31744  }
   0xe   :  { %235 = vmatprep.subr.mxu1 %v272_v0  ;;  %243 = vmatprep.mubr.msk.f32.mxu1 %vm273_vm0, %v272_v0  ;;  %v32_v6 = vld [vmem:[#allocation2] sm:$0xff]  ;;  %v121_v7 = vld [vmem:[%s345_s3 + $0x10] sm:$0xff]  ;;  %v120_v8 = vld [vmem:[%s345_s3 + $0x8] sm:$0xff] }
   0xf   :  { %225 = vmatpush3.msra.mxu0 %v36_v1  ;;  %236 = vmatpush3.msra.mxu1 %v122_v3  ;;  %v119_v9 = vld [vmem:[%s345_s3] sm:$0xff] }
  0x10   :  { %226 = vmatprep.subr.mxu0 %v272_v0  ;;  %237 = vmatprep.subr.mxu1 %v272_v0  ;;  %v210_v10 = vld [vmem:[%s344_s2] ss:$0 sm:$0xff] }
  0x11   :  { %227 = vmatpush3.msra.mxu0 %v35_v2  ;;  %238 = vmatpush3.msra.mxu1 %v121_v7  ;;  %v212_v15 = vld [vmem:[%s346_s4] ss:$0 sm:$0xff] }
  0x12   :  { %228 = vmatprep.subr.mxu0 %v272_v0  ;;  %239 = vmatprep.subr.mxu1 %v272_v0 }
  0x13   :  { %229 = vmatpush3.msra.mxu0 %v34_v4  ;;  %240 = vmatpush3.msra.mxu1 %v120_v8 }
  0x14   :  { %230 = vmatprep.subr.mxu0 %v272_v0  ;;  %241 = vmatprep.subr.mxu1 %v272_v0 }
  0x15   :  { %231 = vmatpush3.msra.mxu0 %v33_v5  ;;  %242 = vmatpush3.msra.mxu1 %v119_v9 }
  0x16   :  { %233 = vmatmul.mubr.msk.f32.vlgmr.msra.gmra.mxu0 %vm44_vm1, %v32_v6 }
  0xd6   :  { %v114_v11 = vpop.f32.mrf.mxu0 }
  0xd7   :  { %v115_v12 = vadd.f32 %v210_v10, %v114_v11 }
  0xd8   :  { %v234_v13 = vpop.f32.mrf.mxu0 }
  0xd9   :  { %v118_v14 = vmax.f32 %v115_v12, 0.0 }
  0xdb   :  { %244 = vmatmul.mubr.msk.f32.vlgmr.msra.gmra.mxu1 %vm44_vm1, %v118_v14 }
 0x19b   :  { %v199_v16 = vpop.f32.mrf.mxu1 }
 0x19c   :  { %v200_v17 = vadd.f32 %v212_v15, %v199_v16 }
 0x19d   :  { %v245_v18 = vpop.f32.mrf.mxu1 }
 0x19e   :  { %204 = vst.msk [vmem:[%s347_s5] sm:$0xff] %vm203_vm2, %v200_v17 }
 0x19f   :  { %209 = vsyncpa [#allocation3], 1 }

</bundles_post_ra>
